<compile_context>
chip_gen: v7x
topology: tpu7x:2x2x1
jax: 0.10.0
libtpu: 0.0.40
codegen_flags: <defaults>
</compile_context>

<pallas_src>
import functools

import jax
import jax.numpy as jnp
from jax import lax
from jax.experimental import pallas as pl
from jax.experimental.pallas import tpu as pltpu


def _chip_budget():
    """Returns (vmem_limit_bytes, target_block_elems) tuned per TPU generation."""
    try:
        vmem_phys = pltpu.get_tpu_info().vmem_capacity_bytes
    except Exception:                       # unknown part -> assume smallest VMEM
        vmem_phys = 64 * 1024 * 1024
    if vmem_phys >= 100 * 1024 * 1024:
        # v5e / v6e: 128 MiB physical VMEM.  Bigger steps amortize the
        # ~0.35us/step overhead and keep every DMA several MiB.
        return 100 * 1024 * 1024, 1_572_864
    # v7x: 64 MiB physical VMEM at 3.2 TB/s.  ~1M elems/step (~4 MiB in +
    # 12 MiB out, double buffered) leaves headroom for elementwise temporaries.
    return 56 * 1024 * 1024, 1_048_576


def _central_diff_lanes(a):
    """d[..., j] = a[..., j+1] - a[..., j-1] with zero padding along the last dim."""
    w = a.shape[-1]
    if w >= 3:
        return jnp.concatenate(
            [a[..., 1:2],                       # col 0:   a[1] - 0
             a[..., 2:] - a[..., :w - 2],       # interior
             -a[..., w - 2:w - 1]],             # col W-1: 0 - a[W-2]
            axis=-1)
    if w == 2:
        return jnp.concatenate([a[..., 1:2], -a[..., 0:1]], axis=-1)
    return jnp.zeros_like(a)                    # W == 1: both neighbours are pad


def _surface_kernel(x_ref, halo_ref, o_ref, *, ragged, last_valid_rows):
    # x_ref:    (TB, 1, TH, W)  depth tile
    # halo_ref: (TB, 1, 2,  W)  row above / row below this tile (0 at borders)
    # o_ref:    (TB, 3, TH, W)  (nx, ny, nz) unit surface normals
    x = x_ref[:, 0]                             # (TB, TH, W)
    top = halo_ref[:, 0, 0:1, :]                # row (tile_start - 1), 0 at image top
    bot = halo_ref[:, 0, 1:2, :]                # row (tile_start + TH), 0 at bottom
    tb, th, w = x.shape

    # dzdx: central difference along lanes, zero padded at the W borders.
    dzdx = _central_diff_lanes(x)

    # dzdy: central difference along rows; cross-tile neighbours from the halo.
    if th >= 3:
        dzdy = jnp.concatenate(
            [x[:, 1:2, :] - top,                     # row 0
             x[:, 2:, :] - x[:, :th - 2, :],         # interior rows
             bot - x[:, th - 2:th - 1, :]],          # row TH-1
            axis=1)
    elif th == 2:
        dzdy = jnp.concatenate([x[:, 1:2, :] - top, bot - x[:, 0:1, :]], axis=1)
    else:
        dzdy = bot - top

    # n = (-dzdx, -dzdy, 1) / ||n||.  ||n||^2 >= 1, so the reference's "+1e-8"
    # on the norm is a <=1e-8 relative perturbation -> lax.rsqrt is safe.
    inv = lax.rsqrt(dzdx * dzdx + dzdy * dzdy + 1.0)
    o_ref[:, 0] = -dzdx * inv
    o_ref[:, 1] = -dzdy * inv
    o_ref[:, 2] = inv                                # nz * inv with nz == 1

    if ragged:
        # H % TH != 0: the last block extends past the image and its extra rows
        # contain undefined data.  The only VALID output row that consumes them
        # is global row H-1 (its row-below lies outside the image); every block
        # row past it is dropped by Pallas on writeback.  Recompute just that
        # one row with a zero down-neighbour -- cost paid on the last tile only.
        @pl.when(pl.program_id(1) == pl.num_programs(1) - 1)
        def _():
            r = last_valid_rows - 1                  # block row of global row H-1
            xr = x[:, r:r + 1, :]                    # (TB, 1, W)
            up = x[:, r - 1:r, :] if r >= 1 else top
            dzdx_r = _central_diff_lanes(xr)
            dzdy_r = -up                             # row below is outside -> zero
            inv_r = lax.rsqrt(dzdx_r * dzdx_r + dzdy_r * dzdy_r + 1.0)
            o_ref[:, 0, r:r + 1, :] = -dzdx_r * inv_r
            o_ref[:, 1, r:r + 1, :] = -dzdy_r * inv_r
            o_ref[:, 2, r:r + 1, :] = inv_r


def surface_net(x, *, row_tile=None, batch_tile=None):
    """x: (B, 1, H, W) depth -> (B, 3, H, W) unit surface normals.

    Correct for any W; production shapes should keep W a multiple of 128 so the
    12 B/pixel output stream uses unmasked lane-dense stores.
    """
    if x.ndim != 4 or x.shape[1] != 1:
        raise ValueError("Input must have shape (B, 1, H, W)")
    B, _, H, W = x.shape
    vmem_limit, target_elems = _chip_budget()

    # ---- tile sizing --------------------------------------------------------
    # Row tile: multiple of 8 (sublane constraint) unless it covers all of H.
    th = int(row_tile) if row_tile is not None else max(8, target_elems // max(W, 1))
    if th >= H:
        th = H
    else:
        th = max(8, (th // 8) * 8)
        if th >= H:
            th = H

    # Batch tile: fold several small images into one grid step (amortizes the
    # ~0.35us/step overhead), but keep the batch grid exact (tb divides B).
    tb = int(batch_tile) if batch_tile is not None else max(1, target_elems // (th * W))
    tb = max(1, min(tb, B))
    while B % tb != 0:
        tb -= 1

    # Megacore: if auto-sizing folded the whole problem into grid=(1, 1), split
    # the batch (preferred) or the rows so both TensorCores get work on v7x.
    # Note: deliberately tiny user tiles (e.g. row_tile=8) would also benefit
    # from pipeline_mode=pl.Buffered(3); default sizing never produces them.
    if row_tile is None and batch_tile is None and tb == B and th == H:
        if B >= 2:
            tb = B // 2
            while B % tb != 0:
                tb -= 1
        elif H > 8:
            th_half = (((H + 1) // 2) + 7) // 8 * 8
            if th_half < H:
                th = th_half

    n_tiles = pl.cdiv(H, th)
    ragged = (H % th) != 0
    last_valid_rows = H - (n_tiles - 1) * th          # in-image rows of last tile

    # ---- halo rows: row above / below each tile (zeros at image borders) ----
    # Built from static strided row slices (a few KB of traffic) instead of a
    # padded-image gather; skipped entirely when there is a single row tile.
    if n_tiles == 1:
        halo = jnp.zeros((B, 1, 2, W), x.dtype)
    else:
        plane = x[:, 0]                                          # (B, H, W)
        zrow = jnp.zeros((B, 1, W), x.dtype)
        above = plane[:, th - 1:(n_tiles - 1) * th:th, :]        # rows t*th - 1
        below = plane[:, th::th, :]                              # rows (t+1)*th
        halo = jnp.stack([jnp.concatenate([zrow, above], axis=1),
                          jnp.concatenate([below, zrow], axis=1)], axis=2)

    kernel = functools.partial(_surface_kernel, ragged=ragged,
                               last_valid_rows=last_valid_rows)

    cost = pl.CostEstimate(
        flops=10 * B * H * W,
        transcendentals=B * H * W,
        bytes_accessed=16 * B * H * W + 8 * B * n_tiles * W,
    )

    return pl.pallas_call(
        kernel,
        out_shape=jax.ShapeDtypeStruct((B, 3, H, W), x.dtype),
        grid=(B // tb, n_tiles),
        in_specs=[
            pl.BlockSpec((tb, 1, th, W), lambda g, t: (g, 0, t, 0)),
            pl.BlockSpec((tb, 1, 2, W), lambda g, t: (g, t, 0, 0)),
        ],
        out_specs=pl.BlockSpec((tb, 3, th, W), lambda g, t: (g, 0, t, 0)),
        compiler_params=pltpu.CompilerParams(
            dimension_semantics=("parallel", "parallel"),
            vmem_limit_bytes=vmem_limit,
        ),
        cost_estimate=cost,
    )(x, halo)


def _surface_net_ref(x):
    """Pure-JAX reference matching the PyTorch module exactly."""
    xp = jnp.pad(x, ((0, 0), (0, 0), (1, 1), (1, 1)))
    dzdx = xp[:, :, 1:-1, 2:] - xp[:, :, 1:-1, :-2]
    dzdy = xp[:, :, 2:, 1:-1] - xp[:, :, :-2, 1:-1]
    dzdz = jnp.ones_like(dzdy)
    sn = jnp.concatenate((-dzdx, -dzdy, dzdz), axis=1)
    nrm = jnp.sqrt(jnp.sum(sn * sn, axis=1, keepdims=True)) + 1e-8
    return sn / nrm


if __name__ == "__main__":
    key = jax.random.PRNGKey(0)

    # Main case: small, lane-dense image (W = 128).  Auto-sizing folds the
    # whole image into one row tile and splits the batch across the grid so a
    # v7x megacore gets one image per TensorCore.
    x = jax.random.uniform(key, (2, 1, 32, 128), dtype=jnp.float32) * 5.0
    out = jax.block_until_ready(surface_net(x))
    ref = _surface_net_ref(x)
    assert out.shape == (2, 3, 32, 128)
    assert jnp.allclose(out, ref, atol=1e-5, rtol=1e-5), "mismatch (default tiling)"

    # Forced small row tiles: exercises the strided-slice halo path.
    out2 = jax.block_until_ready(surface_net(x, row_tile=8, batch_tile=1))
    assert jnp.allclose(out2, ref, atol=1e-5, rtol=1e-5), "mismatch (row tiling)"

    # Ragged H (H % row_tile != 0) and non-128 W (masked stores) still correct;
    # exercises the @pl.when last-tile fixup for global row H-1.
    x3 = jax.random.uniform(jax.random.PRNGKey(1), (1, 1, 20, 48),
                            dtype=jnp.float32) * 3.0
    out3 = jax.block_until_ready(surface_net(x3, row_tile=8, batch_tile=1))
    assert jnp.allclose(out3, _surface_net_ref(x3), atol=1e-5, rtol=1e-5), \
        "mismatch (ragged tiling)"

    # A row_tile that is not a multiple of 8 is rounded down instead of failing
    # the (8, 128) sublane constraint.
    out4 = jax.block_until_ready(surface_net(x, row_tile=12, batch_tile=2))
    assert jnp.allclose(out4, ref, atol=1e-5, rtol=1e-5), "mismatch (rounded tile)"

    print("KERNEL_OK")
</pallas_src>

<mosaic_0001>
module attributes {stable_mosaic.version = 11 : i64} {
  func.func @_surface_kernel(%arg0: i32, %arg1: i32, %arg2: memref<1x1x32x128xf32, #tpu.memory_space<vmem>>, %arg3: memref<1x1x2x128xf32, #tpu.memory_space<vmem>>, %arg4: memref<1x3x32x128xf32, #tpu.memory_space<vmem>>) attributes {dimension_semantics = [#tpu.dimension_semantics<parallel>, #tpu.dimension_semantics<parallel>], iteration_bounds = array<i64: 2, 1>, scalar_prefetch = 0 : i64, scratch_operands = 0 : i64, tpu.core_type = #tpu.core_type<tc>, window_params = [{transform_indices = @transform_0, window_bounds = array<i64: 1, 1, 32, 128>}, {transform_indices = @transform_1, window_bounds = array<i64: 1, 1, 2, 128>}, {transform_indices = @transform_2, window_bounds = array<i64: 1, 3, 32, 128>}]} {
    %c0 = arith.constant 0 : index
    %c0_0 = arith.constant 0 : index
    %c0_1 = arith.constant 0 : index
    %c0_2 = arith.constant 0 : index
    %0 = vector.load %arg2[%c0, %c0_0, %c0_1, %c0_2] : memref<1x1x32x128xf32, #tpu.memory_space<vmem>>, vector<1x1x32x128xf32>
    %1 = vector.shape_cast %0 : vector<1x1x32x128xf32> to vector<1x32x128xf32>
    %c0_3 = arith.constant 0 : index
    %c0_4 = arith.constant 0 : index
    %c0_5 = arith.constant 0 : index
    %c0_6 = arith.constant 0 : index
    %2 = vector.load %arg3[%c0_3, %c0_4, %c0_5, %c0_6] : memref<1x1x2x128xf32, #tpu.memory_space<vmem>>, vector<1x1x1x128xf32>
    %3 = vector.shape_cast %2 : vector<1x1x1x128xf32> to vector<1x1x128xf32>
    %c0_7 = arith.constant 0 : index
    %c0_8 = arith.constant 0 : index
    %c1 = arith.constant 1 : index
    %c0_9 = arith.constant 0 : index
    %4 = vector.load %arg3[%c0_7, %c0_8, %c1, %c0_9] : memref<1x1x2x128xf32, #tpu.memory_space<vmem>>, vector<1x1x1x128xf32>
    %5 = vector.shape_cast %4 : vector<1x1x1x128xf32> to vector<1x1x128xf32>
    %6 = vector.extract_strided_slice %1 {offsets = [0, 0, 1], sizes = [1, 32, 1], strides = [1, 1, 1]} : vector<1x32x128xf32> to vector<1x32x1xf32>
    %7 = vector.extract_strided_slice %1 {offsets = [0, 0, 2], sizes = [1, 32, 126], strides = [1, 1, 1]} : vector<1x32x128xf32> to vector<1x32x126xf32>
    %8 = vector.extract_strided_slice %1 {offsets = [0, 0, 0], sizes = [1, 32, 126], strides = [1, 1, 1]} : vector<1x32x128xf32> to vector<1x32x126xf32>
    %9 = arith.subf %7, %8 : vector<1x32x126xf32>
    %10 = vector.extract_strided_slice %1 {offsets = [0, 0, 126], sizes = [1, 32, 1], strides = [1, 1, 1]} : vector<1x32x128xf32> to vector<1x32x1xf32>
    %cst = arith.constant 0.000000e+00 : f32
    %11 = vector.broadcast %cst : f32 to vector<1x32x1xf32>
    %12 = arith.subf %11, %10 : vector<1x32x1xf32>
    %13 = tpu.concatenate %6, %9, %12 in 2 : vector<1x32x1xf32>, vector<1x32x126xf32>, vector<1x32x1xf32> -> vector<1x32x128xf32>
    %14 = vector.extract_strided_slice %1 {offsets = [0, 1, 0], sizes = [1, 1, 128], strides = [1, 1, 1]} : vector<1x32x128xf32> to vector<1x1x128xf32>
    %15 = arith.subf %14, %3 : vector<1x1x128xf32>
    %16 = vector.extract_strided_slice %1 {offsets = [0, 2, 0], sizes = [1, 30, 128], strides = [1, 1, 1]} : vector<1x32x128xf32> to vector<1x30x128xf32>
    %17 = vector.extract_strided_slice %1 {offsets = [0, 0, 0], sizes = [1, 30, 128], strides = [1, 1, 1]} : vector<1x32x128xf32> to vector<1x30x128xf32>
    %18 = arith.subf %16, %17 : vector<1x30x128xf32>
    %19 = vector.extract_strided_slice %1 {offsets = [0, 30, 0], sizes = [1, 1, 128], strides = [1, 1, 1]} : vector<1x32x128xf32> to vector<1x1x128xf32>
    %20 = arith.subf %5, %19 : vector<1x1x128xf32>
    %21 = tpu.concatenate %15, %18, %20 in 1 : vector<1x1x128xf32>, vector<1x30x128xf32>, vector<1x1x128xf32> -> vector<1x32x128xf32>
    %22 = arith.mulf %13, %13 : vector<1x32x128xf32>
    %23 = arith.mulf %21, %21 : vector<1x32x128xf32>
    %24 = arith.addf %22, %23 : vector<1x32x128xf32>
    %cst_10 = arith.constant 1.000000e+00 : f32
    %25 = vector.broadcast %cst_10 : f32 to vector<1x32x128xf32>
    %26 = arith.addf %24, %25 : vector<1x32x128xf32>
    %27 = math.rsqrt %26 : vector<1x32x128xf32>
    %cst_11 = arith.constant 0.000000e+00 : f32
    %28 = vector.broadcast %cst_11 : f32 to vector<1x32x128xf32>
    %29 = arith.subf %28, %13 : vector<1x32x128xf32>
    %30 = arith.mulf %29, %27 : vector<1x32x128xf32>
    %c0_12 = arith.constant 0 : index
    %c0_13 = arith.constant 0 : index
    %c0_14 = arith.constant 0 : index
    %c0_15 = arith.constant 0 : index
    %31 = vector.load %arg4[%c0_12, %c0_13, %c0_14, %c0_15] : memref<1x3x32x128xf32, #tpu.memory_space<vmem>>, vector<1x1x32x128xf32>
    %32 = vector.shape_cast %31 : vector<1x1x32x128xf32> to vector<1x32x128xf32>
    %33 = vector.shape_cast %30 : vector<1x32x128xf32> to vector<1x1x32x128xf32>
    tpu.vector_store %arg4[%c0_12, %c0_13, %c0_14, %c0_15], %33 {strides = array<i32>} : memref<1x3x32x128xf32, #tpu.memory_space<vmem>>, vector<1x1x32x128xf32>,
    %cst_16 = arith.constant 0.000000e+00 : f32
    %34 = vector.broadcast %cst_16 : f32 to vector<1x32x128xf32>
    %35 = arith.subf %34, %21 : vector<1x32x128xf32>
    %36 = arith.mulf %35, %27 : vector<1x32x128xf32>
    %c0_17 = arith.constant 0 : index
    %c1_18 = arith.constant 1 : index
    %c0_19 = arith.constant 0 : index
    %c0_20 = arith.constant 0 : index
    %37 = vector.load %arg4[%c0_17, %c1_18, %c0_19, %c0_20] : memref<1x3x32x128xf32, #tpu.memory_space<vmem>>, vector<1x1x32x128xf32>
    %38 = vector.shape_cast %37 : vector<1x1x32x128xf32> to vector<1x32x128xf32>
    %39 = vector.shape_cast %36 : vector<1x32x128xf32> to vector<1x1x32x128xf32>
    tpu.vector_store %arg4[%c0_17, %c1_18, %c0_19, %c0_20], %39 {strides = array<i32>} : memref<1x3x32x128xf32, #tpu.memory_space<vmem>>, vector<1x1x32x128xf32>,
    %c0_21 = arith.constant 0 : index
    %c2 = arith.constant 2 : index
    %c0_22 = arith.constant 0 : index
    %c0_23 = arith.constant 0 : index
    %40 = vector.load %arg4[%c0_21, %c2, %c0_22, %c0_23] : memref<1x3x32x128xf32, #tpu.memory_space<vmem>>, vector<1x1x32x128xf32>
    %41 = vector.shape_cast %40 : vector<1x1x32x128xf32> to vector<1x32x128xf32>
    %42 = vector.shape_cast %27 : vector<1x32x128xf32> to vector<1x1x32x128xf32>
    tpu.vector_store %arg4[%c0_21, %c2, %c0_22, %c0_23], %42 {strides = array<i32>} : memref<1x3x32x128xf32, #tpu.memory_space<vmem>>, vector<1x1x32x128xf32>,
    return
  }
  func.func @transform_0(%arg0: i32, %arg1: i32) -> (i32, i32, i32, i32) {
    %c0_i32 = arith.constant 0 : i32
    %c0_i32_0 = arith.constant 0 : i32
    %c0_i32_1 = arith.constant 0 : i32
    return %arg0, %c0_i32, %arg1, %c0_i32_0 : i32, i32, i32, i32
  }
  func.func @transform_1(%arg0: i32, %arg1: i32) -> (i32, i32, i32, i32) {
    %c0_i32 = arith.constant 0 : i32
    %c0_i32_0 = arith.constant 0 : i32
    %c0_i32_1 = arith.constant 0 : i32
    return %arg0, %arg1, %c0_i32, %c0_i32_0 : i32, i32, i32, i32
  }
  func.func @transform_2(%arg0: i32, %arg1: i32) -> (i32, i32, i32, i32) {
    %c0_i32 = arith.constant 0 : i32
    %c0_i32_0 = arith.constant 0 : i32
    %c0_i32_1 = arith.constant 0 : i32
    return %arg0, %c0_i32, %arg1, %c0_i32_0 : i32, i32, i32, i32
  }
}

</mosaic_0001>

<bundles_post_ra>
// kernel: tpu_custom_call.1
= control target key start
LH: loop header
LB: loop body
LE: loop exit
PB: predicated region body
PF: predicated region fallthrough
CT: control target
= control target key end

     0   :  { %7 = vsyncpa [#allocation3], 0  ;;  %s1071_s0 = inlined_call_operand.hbm [shape: f32[2,1,32,128], index: 0, kind: input, shape index: {}]   ;;  %s1072_s1 = inlined_call_operand.hbm [shape: f32[2,1,2,128], index: 1, kind: input, shape index: {}]   ;;  %s1073_s2 = inlined_call_operand.hbm [shape: f32[2,3,32,128], index: 2, kind: output, shape index: {}]  }
   0x1   :  { %9 = vsyncpa [#allocation3 + $0x1], 0 }
   0x2   :  { %10 = vsyncpa [#allocation6], 0 }
   0x3   :  { %12 = vsyncpa [#allocation6 + $0x1], 0 }
   0x4   :  { %13 = vsyncpa [#allocation4], 0 }
   0x5   :  { %15 = vsyncpa [#allocation4 + $0x1], 0  ;;  %s811_s9 = smov 0   ;;  %s813_s10 = smov 0  }
   0x6   :  { %s815_s11 = smov 0   ;;  %s817_s12 = smov 0  }
   0x7   :  { %s819_s13 = smov 0   ;;  %s821_s14 = smov 0  }
   0x8 LB: > { %s530_s15 = sadd.s32 4294967295, %s784_s14   ;;  %s531_s16 = sadd.s32 4294967294, %s784_s14   ;;  %s784_s14 = sphi %s821_s14, %s21_s14   ;;  %s780_s13 = sphi %s819_s13, %s1092_s13   ;;  %s776_s12 = sphi %s817_s12, %s1091_s12   ;;  %s772_s11 = sphi %s815_s11, %s1090_s11   ;;  %s768_s10 = sphi %s813_s10, %s1089_s10   ;;  %s764_s9 = sphi %s811_s9, %s1088_s9  }
   0x9   : > { %s33_s17 = sadd.s32 1, %s780_s13  ;;  %s42_s18 = sadd.s32 1, %s772_s11 }
   0xa   : > { %p35_p0 = scmp.ge.s32.totalorder %s33_s17, 2  ;;  %p49_p1 = scmp.ne.s32.totalorder %s772_s11, %s768_s10 }
   0xb   : > { %p50_p2 = scmp.eq.s32.totalorder %s784_s14, 0  ;;  %p55_p3 = scmp.ne.s32.totalorder %s768_s10, %s764_s9 }
   0xc   : > { %s1094_s17 = smov (%p35_p0, %s33_s17), 0  ;;  %p56_p5 = scmp.eq.s32.totalorder %s530_s15, 0 }
   0xd   : > { %p852_p4 = por %p50_p2, %p49_p1  ;;  %s37_s20 = ssub.s32 %s780_s13, %s1094_s17 }
   0xe   : > { %p109_p6 = scmp.eq.s32.totalorder %s530_s15, 1  ;;  %p40_p7 = scmp.eq.s32.totalorder %s37_s20, 0 }
   0xf   : > { %p858_p8 = por %p56_p5, %p55_p3  ;;  %p115_p10 = scmp.eq.s32.totalorder %s531_s16, 1 }
  0x10   : > { %p862_p9 = por %p109_p6, %p49_p1  ;;  %p573_p13 = scmp.lt.s32.totalorder %s784_s14, 2 }
  0x11   : > { %s1077_s21 = scalar_select %p858_p8, 1, 0 }
  0x12   : > { %s1078_s22 = scalar_select %p862_p9, 1, 0 }
  0x13   : > { %s867_s23 = scalar_select %p40_p7, %s772_s11, %s42_s18  }
  0x14   : > { %p869_p11 = por %p115_p10, %p55_p3  ;;  %s876_s25 = sand.u32 1, %s772_s11  }
  0x15   : > { %s534_s26 = sshll.u32 %s876_s25, 5  ;;  %s553_s27 = sshll.u32 %s780_s13, 9 }
  0x16   : > { %s1079_s24 = scalar_select %p869_p11, 1, 0 }
  0x17   : > { %s883_s30 = scalar_lea.hbm %s1071_s0, %s553_s27  ;;  %s139_s3 = scalar_lea.vmem [#allocation2], %s534_s26 }
  0x18   : > { %s148_s4 = sshll.u32 %s139_s3, 4  ;;  %p889_p0 = pnand %p573_p13, %p852_p4  ;;  %s885_s4 = int_to_ptr.vmem [resolvable:$true] %s148_s4 }
  0x19   : > { %s136_s6 = scalar_lea.sflag [#allocation3], %s876_s25  ;;  %s638_s7 = scalar_lea.hbm %s883_s30, 512 }
  0x1a   : > { %p639_p2 = scmp.ne.s32.totalorder %s883_s30, %s638_s7  ;;  %p640_p3 = pneg %p889_p0 }
  0x1b   : > { %s643_s16 = scalar_lea.hbm %s1071_s0, 1024  ;;  %p644_p4 = scmp.lt.u32.totalorder %s883_s30, %s1071_s0 }
  0x1c   : > { %p641_p5 = pnand %p640_p3, %p639_p2  ;;  %p645_p7 = scmp.lt.u32.totalorder %s643_s16, %s638_s7 }
  0x1d   : > { %p647_p13 = scmp.lt.u32.totalorder %s638_s7, %s883_s30 }
  0x1e   : > { %p642_p6 = pneg %p641_p5  ;;  %p646_p10 = por %p645_p7, %p644_p4 }
  0x20   : > { %p648_p12 = por %p647_p13, %p646_p10 }
  0x22   : > { %p649_p1 = pnand %p648_p12, %p642_p6 }
  0x24   : > { %652 = shalt.err (!%p649_p1)
}
  0x25   : > { %s653_s20 = scalar_lea.vmem %s885_s4, 512  ;;  %s786_s26 = smov [#allocation2]  }
  0x26   : > { %p654_p2 = scmp.ne.s32.totalorder %s885_s4, %s653_s20  ;;  %s658_s27 = sshll.u32 %s786_s26, 4  ;;  %s659_s27 = int_to_ptr.vmem [resolvable:$false] %s658_s27 }
  0x27   : > { %s660_s28 = scalar_lea.vmem %s659_s27, 1024  ;;  %p661_p9 = scmp.lt.s32.totalorder %s885_s4, %s659_s27 }
  0x28   : > { %p656_p5 = pnand %p654_p2, %p640_p3  ;;  %p662_p4 = scmp.lt.s32.totalorder %s660_s28, %s653_s20 }
  0x2a   : > { %p657_p11 = pneg %p656_p5  ;;  %p663_p7 = por %p662_p4, %p661_p9 }
  0x2c   : > { %p664_p10 = pnand %p663_p7, %p657_p11 }
  0x2e   : > { %667 = shalt.err (!%p664_p10)
}
  0x2f   : > { %s787_s29 = smov 128   ;;  %s788_s3 = smov 8  }
  0x30   : > { %565 = dma.hbm_to_vmem [thread:$0]  (!%p889_p0), %s883_s30, 512, %s885_s4, %s136_s6, %s787_s29, %s787_s29, %s788_s3  }
  0x31   : > { %p175_p12 = scmp.lt.s32.totalorder %s784_s14, 3  ;;  %s537_s7 = sshll.u32 %s876_s25, 1 }
  0x32   : > { %s538_s8 = sshll.u32 %s780_s13, 5  ;;  %p1081_p9 = scmp.ge.s32.totalorder %s784_s14, 1 }
  0x33   : > { %s934_s19 = scalar_lea.hbm %s1072_s1, %s538_s8  ;;  %s162_s20 = scalar_lea.vmem [#allocation5], %s537_s7 }
  0x34   : > { %p927_p11 = pnand %p1081_p9, %p175_p12  ;;  %s170_s26 = sshll.u32 %s162_s20, 4  ;;  %s171_s26 = int_to_ptr.vmem [resolvable:$true] %s170_s26 }
  0x35   : > { %s159_s30 = scalar_lea.sflag [#allocation6], %s876_s25  ;;  %s668_s4 = scalar_lea.hbm %s934_s19, 32 }
  0x36   : > { %s1082_s15 = scalar_select %p927_p11, 1, 0 }
  0x37   : > { %p669_p1 = scmp.ne.s32.totalorder %s934_s19, %s668_s4  ;;  %s673_s28 = scalar_lea.hbm %s1072_s1, 64 }
  0x38   : > { %p674_p2 = scmp.lt.u32.totalorder %s934_s19, %s1072_s1  ;;  %p675_p5 = scmp.lt.u32.totalorder %s673_s28, %s668_s4 }
  0x39   : > { %p671_p6 = pnand %p669_p1, %p640_p3  ;;  %p677_p7 = scmp.lt.u32.totalorder %s668_s4, %s934_s19 }
  0x3a   : > { %p676_p4 = por %p675_p5, %p674_p2 }
  0x3b   : > { %p672_p13 = pneg %p671_p6 }
  0x3c   : > { %p678_p10 = por %p677_p7, %p676_p4 }
  0x3e   : > { %p679_p12 = pnand %p678_p10, %p672_p13 }
  0x40   : > { %682 = shalt.err (!%p679_p12)
}
  0x41   : > { %s683_s25 = scalar_lea.vmem %s171_s26, 32  ;;  %s789_s7 = smov [#allocation5]  }
  0x42   : > { %p684_p9 = scmp.ne.s32.totalorder %s171_s26, %s683_s25  ;;  %s688_s8 = sshll.u32 %s789_s7, 4  ;;  %s689_s8 = int_to_ptr.vmem [resolvable:$false] %s688_s8 }
  0x43   : > { %s690_s16 = scalar_lea.vmem %s689_s8, 64  ;;  %p691_p8 = scmp.lt.s32.totalorder %s171_s26, %s689_s8 }
  0x44   : > { %p686_p1 = pnand %p684_p9, %p640_p3  ;;  %p692_p11 = scmp.lt.s32.totalorder %s690_s16, %s683_s25 }
  0x46   : > { %p687_p6 = pneg %p686_p1  ;;  %p693_p2 = por %p692_p11, %p691_p8 }
  0x48   : > { %p694_p5 = pnand %p693_p2, %p687_p6 }
  0x4a   : > { %697 = shalt.err (!%p694_p5)
}
  0x4b   : > { %568 = dma.hbm_to_vmem [thread:$0]  (!%p889_p0), %s934_s19, 32, %s171_s26, %s159_s30  }
  0x4c   : > { %p1083_p13 = scmp.ne.s32.totalorder %s1082_s15, 0 }
  0x4d   : > { %s959_s18 = sand.u32 (!%p1083_p13), 1, %s768_s10   ;;  %p1084_p3 = scmp.ne.s32.totalorder (!%p1083_p13), %s1077_s21, 0 }
  0x4e   : > { %179 = sbr.rel (%p1083_p13) target bundleno = 369 (0x171), region = 28  ;;  %s540_s20 = sshll.u32 (!%p1083_p13), %s959_s18, 5 }
  0x4f   : > { %s182_s4 = scalar_lea.sflag (!%p1083_p13), [#allocation3], %s959_s18  ;;  %s185_s6 = scalar_lea.vmem (!%p1083_p13), [#allocation2], %s540_s20 }
  0x55   : > { %751 = dma.done.wait (%p1084_p3), %s182_s4, 512  }
  0x56   : > { %753 = vsyncadd (%p1084_p3), %s182_s4, 4294966784  ;;  %s541_s5 = sshll.u32 %s959_s18, 1  ;;  %s191_s15 = scalar_lea.sflag [#allocation6], %s959_s18 }
  0x57   : > { %s969_s19 = scalar_lea.vmem [#allocation5], %s541_s5 }
  0x58   : > { %755 = dma.done.wait (%p1084_p3), %s191_s15, 32  }
  0x59   : > { %757 = vsyncadd (%p1084_p3), %s191_s15, 4294967264  ;;  %v222_v0 = vld [vmem:[%s185_s6] sm:$0xff]  ;;  %v224_v1 = vld [vmem:[%s185_s6 + $0x10] sm:$0xff]  ;;  %s790_s26 = smov 2   ;;  %s791_s30 = smov 127   ;;  %vm310_vm0 = vcmask 1041408  }
  0x5a   : > { %232 = vrot.lane.b32.xlu0 %v222_v0, %s790_s26  ;;  %236 = vrot.lane.b32.xlu1 %v224_v1, %s790_s26  ;;  %v223_v2 = vld [vmem:[%s185_s6 + $0x8] sm:$0xff]  ;;  %v975_v3 = vld [vmem:[%s185_s6 + $0x18] sm:$0xff]  ;;  %v248_v4 = vsub.f32 0.0, %v222_v0  ;;  %s792_s21 = smov 1   ;;  %v250_v14 = vsub.f32 0.0, %v224_v1  ;;  %v311_v17 = vrot.slane %v222_v0, 6 }
  0x5b   : > { %v249_v5 = vsub.f32 0.0, %v223_v2  ;;  %v251_v15 = vsub.f32 0.0, %v975_v3  ;;  %v312_v16 = vrot.slane %v223_v2, 6  ;;  %v226_v19 = vld [vmem:[%s969_s19] sm:$0x1]  ;;  %v314_v22 = vrot.slane %v224_v1, 6 }
  0x5c   : > { %v307_v21 = vrot.slane %v226_v19, 7  ;;  %v322_v24 = vsub.f32 %v222_v0, %v311_v17  ;;  %v316_v28 = vrot.slane %v975_v3, 6  ;;  %vm335_vm1 = vcmask 1046528   ;;  %v227_v42 = vld [vmem:[%s969_s19 + $0x1] sm:$0x1]  ;;  %s554_s27 = smul.u32 96, %s959_s18 }
  0x5d   : > { %v313_v20 = vsel %vm310_vm0, %v311_v17, %v312_v16  ;;  %v315_v31 = vsel %vm310_vm0, %v312_v16, %v314_v22  ;;  %vm350_vm2 = vcmask 1040384   ;;  %vm296_vm3 = vcmask 7168   ;;  %s555_s29 = smul.u32 1536, %s776_s12  ;;  %s404_s12 = scalar_lea.sflag [#allocation4], %s959_s18 }
  0x5e   : > { %234 = vrot.lane.b32.xlu0 %v223_v2, %s790_s26  ;;  %238 = vrot.lane.b32.xlu1 %v975_v3, %s790_s26  ;;  %v323_v25 = vsub.f32 %v223_v2, %v313_v20  ;;  %v309_v27 = vsub.f32 %v222_v0, %v307_v21  ;;  %v336_v29 = vrot.slane %v322_v24, 1  ;;  %v324_v34 = vsub.f32 %v224_v1, %v315_v31  ;;  %s1001_s28 = scalar_lea.vmem [#allocation7], %s554_s27  ;;  %p1085_p0 = scmp.ne.s32.totalorder %s1078_s22, 0 }
  0x5f   : > { %v317_v37 = vsel %vm310_vm0, %v314_v22, %v316_v28  ;;  %vm301_vm4 = vcmask 1039360   ;;  %v327_v48 = vsub.f32 %v227_v42, %v316_v28  ;;  %s419_s3 = sshll.u32 %s1001_s28, 4  ;;  %s1017_s8 = scalar_lea.hbm %s1073_s2, %s555_s29  ;;  %s1019_s3 = int_to_ptr.vmem [resolvable:$true] %s419_s3 }
  0x60   : > { %v337_v30 = vrot.slane %v323_v25, 1  ;;  %v329_v33 = vrot.slane %v309_v27, 1  ;;  %v339_v39 = vrot.slane %v324_v34, 1  ;;  %v325_v40 = vsub.f32 %v975_v3, %v317_v37  ;;  %s698_s16 = scalar_lea.vmem %s1019_s3, 1536  ;;  %s793_s20 = smov [#allocation7]  }
  0x61   : > { %v348_v57 = vrot.slane %v327_v48, 1  ;;  %p699_p8 = scmp.ne.s32.totalorder %s1019_s3, %s698_s16  ;;  %s702_s4 = sshll.u32 %s793_s20, 4  ;;  %s703_s4 = int_to_ptr.vmem [resolvable:$false] %s702_s4 }
  0x62   : > { %252 = vrot.lane.b32.xlu0 %v222_v0, %s791_s30  ;;  %254 = vrot.lane.b32.xlu1 %v223_v2, %s791_s30  ;;  %v338_v36 = vsel %vm335_vm1, %v336_v29, %v337_v30  ;;  %v340_v46 = vsel %vm335_vm1, %v337_v30, %v339_v39  ;;  %v341_v47 = vrot.slane %v325_v40, 1  ;;  %s704_s6 = scalar_lea.vmem %s703_s4, 3072  ;;  %p705_p7 = scmp.lt.s32.totalorder %s1019_s3, %s703_s4 }
  0x63   : > { %v351_v38 = vsel %vm350_vm2, %v329_v33, %v338_v36  ;;  %v358_v52 = vmul.f32 %v340_v46, %v340_v46  ;;  %v386_v20 = vsub.f32 0.0, %v340_v46  ;;  %p700_p11 = pnand %p699_p8, %p1085_p0  ;;  %p706_p10 = scmp.lt.s32.totalorder %s704_s6, %s698_s16 }
  0x64   : > { %v357_v43 = vmul.f32 %v351_v38, %v351_v38  ;;  %v342_v56 = vsel %vm335_vm1, %v339_v39, %v341_v47 }
  0x65   : > { %v359_v63 = vmul.f32 %v342_v56, %v342_v56  ;;  %p701_p4 = pneg %p700_p11  ;;  %p707_p12 = por %p706_p10, %p705_p7 }
  0x66   : > { %256 = vrot.lane.b32.xlu0 %v224_v1, %s791_s30  ;;  %258 = vrot.lane.b32.xlu1 %v975_v3, %s791_s30 }
  0x67   : > { %p708_p9 = pnand %p707_p12, %p701_p4 }
  0x6a   : > { %284 = vrot.lane.b32.xlu0 %v248_v4, %s792_s21  ;;  %286 = vrot.lane.b32.xlu1 %v249_v5, %s792_s21 }
  0xcc   : > { %v233_v6 = vpop.permute.xlu0 %232  ;;  %v237_v7 = vpop.permute.xlu1 %236 }
  0xcd   : > { %v244_v8 = vsub.f32 %v222_v0, %v233_v6  ;;  %v246_v9 = vsub.f32 %v224_v1, %v237_v7 }
  0xcf   : > { %268 = vrot.lane.b32.xlu0 %v244_v8, %s791_s30 }
  0xd0   : > { %v235_v10 = vpop.permute.xlu0 %234  ;;  %v239_v11 = vpop.permute.xlu1 %238 }
  0xd1   : > { %v245_v12 = vsub.f32 %v223_v2, %v235_v10  ;;  %v247_v13 = vsub.f32 %v975_v3, %v239_v11  ;;  %v352_v3 = vsel %vm335_vm1, %v341_v47, %v348_v57 }
  0xd2   : > { %v360_v8 = vmul.f32 %v352_v3, %v352_v3  ;;  %v388_v30 = vsub.f32 0.0, %v352_v3 }
  0xd3   : > { %270 = vrot.lane.b32.xlu1 %v245_v12, %s791_s30  ;;  %272 = vrot.lane.b32.xlu0 %v246_v9, %s791_s30 }
  0xd4   : > { %v253_v18 = vpop.permute.xlu0 %252  ;;  %v255_v23 = vpop.permute.xlu1 %254 }
  0xd7   : > { %274 = vrot.lane.b32.xlu1 %v247_v13, %s791_s30  ;;  %288 = vrot.lane.b32.xlu0 %v250_v14, %s792_s21  ;;  %v385_v13 = vsub.f32 0.0, %v351_v38 }
  0xd8   : > { %v257_v26 = vpop.permute.xlu0 %256  ;;  %v259_v32 = vpop.permute.xlu1 %258 }
  0xdb   : > { %290 = vrot.lane.b32.xlu1 %v251_v15, %s792_s21 }
  0xdc   : > { %v285_v35 = vpop.permute.xlu0 %284  ;;  %v287_v41 = vpop.permute.xlu1 %286 }
 0x141   : > { %v269_v44 = vpop.permute.xlu0 %268 }
 0x142   : > { %v297_v45 = vsel %vm296_vm3, %v253_v18, %v269_v44 }
 0x143   : > { %v302_v49 = vsel %vm301_vm4, %v297_v45, %v285_v35 }
 0x144   : > { %v353_v50 = vmul.f32 %v302_v49, %v302_v49  ;;  %v373_v15 = vsub.f32 0.0, %v302_v49 }
 0x145   : > { %v271_v51 = vpop.permute.xlu1 %270  ;;  %v273_v53 = vpop.permute.xlu0 %272 }
 0x146   : > { %v361_v54 = vadd.f32 %v357_v43, %v353_v50  ;;  %v298_v55 = vsel %vm296_vm3, %v255_v23, %v271_v51  ;;  %v299_v61 = vsel %vm296_vm3, %v257_v26, %v273_v53  ;;  %v387_v23 = vsub.f32 0.0, %v342_v56 }
 0x147   : > { %v303_v58 = vsel %vm301_vm4, %v298_v55, %v287_v41 }
 0x148   : > { %v365_v59 = vadd.f32 1.0, %v361_v54  ;;  %v354_v60 = vmul.f32 %v303_v58, %v303_v58  ;;  %v374_v21 = vsub.f32 0.0, %v303_v58 }
 0x149   : > { %v275_v62 = vpop.permute.xlu1 %274  ;;  %v289_v0 = vpop.permute.xlu0 %288 }
 0x14a   : > { %630 = vrsqrt.f32 %v365_v59  ;;  %v362_v1 = vadd.f32 %v358_v52, %v354_v60  ;;  %v304_v2 = vsel %vm301_vm4, %v299_v61, %v289_v0  ;;  %v300_v6 = vsel %vm296_vm3, %v259_v32, %v275_v62 }
 0x14b   : > { %v355_v4 = vmul.f32 %v304_v2, %v304_v2  ;;  %v375_v26 = vsub.f32 0.0, %v304_v2 }
 0x14c   : > { %v366_v5 = vadd.f32 1.0, %v362_v1 }
 0x14d   : > { %v363_v7 = vadd.f32 %v359_v63, %v355_v4  ;;  %v291_v9 = vpop.permute.xlu1 %290 }
 0x14e   : > { %632 = vrsqrt.f32 %v366_v5  ;;  %v305_v10 = vsel %vm301_vm4, %v300_v6, %v291_v9 }
 0x14f   : > { %v367_v11 = vadd.f32 1.0, %v363_v7  ;;  %v356_v12 = vmul.f32 %v305_v10, %v305_v10  ;;  %v376_v31 = vsub.f32 0.0, %v305_v10 }
 0x151   : > { %634 = vrsqrt.f32 %v367_v11  ;;  %v364_v14 = vadd.f32 %v360_v8, %v356_v12 }
 0x153   : > { %v368_v16 = vadd.f32 1.0, %v364_v14 }
 0x154   : > { %v631_v17 = vpop.eup %630 }
 0x155   : > { %v377_v18 = vmul.f32 %v631_v17, %v373_v15  ;;  %v389_v19 = vmul.f32 %v631_v17, %v385_v13  ;;  %546 = vst [vmem:[%s1001_s28 + $0x40] sm:$0xff] %v631_v17  ;;  %636 = vrsqrt.f32 %v368_v16 }
 0x157   : > { %381 = vst [vmem:[%s1001_s28] sm:$0xff] %v377_v18  ;;  %542 = vst [vmem:[%s1001_s28 + $0x20] sm:$0xff] %v389_v19 }
 0x158   : > { %v633_v22 = vpop.eup %632 }
 0x159   : > { %v378_v24 = vmul.f32 %v633_v22, %v374_v21  ;;  %v390_v25 = vmul.f32 %v633_v22, %v386_v20  ;;  %547 = vst [vmem:[%s1001_s28 + $0x48] sm:$0xff] %v633_v22 }
 0x15b   : > { %v635_v27 = vpop.eup %634  ;;  %382 = vst [vmem:[%s1001_s28 + $0x8] sm:$0xff] %v378_v24  ;;  %543 = vst [vmem:[%s1001_s28 + $0x28] sm:$0xff] %v390_v25 }
 0x15c   : > { %v379_v28 = vmul.f32 %v635_v27, %v375_v26  ;;  %v391_v29 = vmul.f32 %v635_v27, %v387_v23  ;;  %548 = vst [vmem:[%s1001_s28 + $0x50] sm:$0xff] %v635_v27 }
 0x15e   : > { %383 = vst [vmem:[%s1001_s28 + $0x10] sm:$0xff] %v379_v28  ;;  %544 = vst [vmem:[%s1001_s28 + $0x30] sm:$0xff] %v391_v29 }
 0x15f   : > { %v637_v32 = vpop.eup %636 }
 0x160   : > { %v380_v33 = vmul.f32 %v637_v32, %v376_v31  ;;  %v392_v34 = vmul.f32 %v637_v32, %v388_v30  ;;  %549 = vst [vmem:[%s1001_s28 + $0x58] sm:$0xff] %v637_v32 }
 0x162   : > { %384 = vst [vmem:[%s1001_s28 + $0x18] sm:$0xff] %v380_v33  ;;  %545 = vst [vmem:[%s1001_s28 + $0x38] sm:$0xff] %v392_v34 }
 0x163   : > { %711 = shalt.err (!%p708_p9)
}
 0x164   : > { %s712_s5 = scalar_lea.hbm %s1017_s8, 1536  ;;  %s716_s26 = scalar_lea.hbm %s1073_s2, 3072 }
 0x165   : > { %p713_p1 = scmp.ne.s32.totalorder %s1017_s8, %s712_s5  ;;  %p717_p5 = scmp.lt.u32.totalorder %s1017_s8, %s1073_s2 }
 0x166   : > { %p718_p13 = scmp.lt.u32.totalorder %s716_s26, %s712_s5  ;;  %p720_p8 = scmp.lt.u32.totalorder %s712_s5, %s1017_s8 }
 0x167   : > { %p714_p6 = pnand %p713_p1, %p1085_p0 }
 0x168   : > { %p719_p3 = por %p718_p13, %p717_p5 }
 0x169   : > { %p715_p2 = pneg %p714_p6 }
 0x16a   : > { %p721_p11 = por %p720_p8, %p719_p3 }
 0x16c   : > { %p722_p4 = pnand %p721_p11, %p715_p2 }
 0x16e   : > { %725 = shalt.err (!%p722_p4)
}
 0x16f   : > { %s794_s27 = smov 128   ;;  %s795_s28 = smov 8  }
 0x170   : > { %560 = dma.vmem_to_hbm [thread:$0]  (%p1085_p0), %s1019_s3, 1536, %s1017_s8, %s404_s12, %s794_s27, %s794_s27, %s795_s28  }
 0x171 PF: > { %s434_s29 = sand.u32 1, %s764_s9   ;;  %p1086_p7 = scmp.ne.s32.totalorder %s1079_s24, 0 }
 0x172   : > { %p1087_p10 = scmp.ge.s32.totalorder %s784_s14, 2  ;;  %s435_s25 = scalar_lea.sflag [#allocation4], %s434_s29 }
 0x174   : > { %p570_p12 = pnand %p1087_p10, %p1086_p7 }
 0x176   : > { %759 = dma.done.wait (!%p570_p12), %s435_s25, 1536  }
 0x177   : > { %761 = vsyncadd (!%p570_p12), %s435_s25, 4294965760  ;;  %s21_s14 = sadd.s32 1, %s784_s14   ;;  %s1088_s9 = smov %s768_s10 }
 0x178   : > { %p18_p9 = scmp.ge.s32.totalorder %s21_s14, 4   ;;  %s1089_s10 = smov %s772_s11 }
 0x179   : > { %s1090_s11 = smov %s867_s23  ;;  %s1091_s12 = smov %s780_s13 }
 0x17a   : > { %s1092_s13 = smov %s1094_s17  ;;  %20 = sbr.rel (!%p18_p9) target bundleno = 8 (0x8), region = 88 }
 0x181   :  { %440 = vsyncpa [#allocation3], 1 }
 0x182   :  { %442 = vsyncpa [#allocation3 + $0x1], 1 }
 0x183   :  { %443 = vsyncpa [#allocation6], 1 }
 0x184   :  { %445 = vsyncpa [#allocation6 + $0x1], 1 }
 0x185   :  { %446 = vsyncpa [#allocation4], 1 }
 0x186   :  { %448 = vsyncpa [#allocation4 + $0x1], 1 }

</bundles_post_ra>
